<compile_context>
chip_gen: v5e
topology: v5e:2x2
jax: 0.10.0
libtpu: 0.0.40
codegen_flags: <defaults>
</compile_context>

<pallas_src>
import jax
import jax.numpy as jnp
from jax.experimental import pallas as pl
from jax.experimental.pallas import tpu as pltpu


def _round_up(x: int, m: int) -> int:
    return (x + m - 1) // m * m


def _cdiv(a: int, b: int) -> int:
    return -(-a // b)


def _vmem_budget_bytes() -> int:
    """Per-generation VMEM budget with headroom (v5e/v6e ~128 MiB, v7x 64 MiB/TC)."""
    try:
        cap = int(pltpu.get_tpu_info().vmem_capacity_bytes)
    except Exception:
        cap = 64 * 1024 * 1024  # conservative fallback: v7x per-TC physical VMEM
    return int(cap * 0.70)


# --------------------------------------------------------------------------- #
# Kernels
# --------------------------------------------------------------------------- #
def _mlp_kernel_resident(x_ref, w1_ref, b1_ref, w2_ref, b2_ref, o_ref):
    """Whole contraction in one shot (w1 resident in VMEM); one batch tile."""
    # First layer on the MXU, f32 accumulation.
    h = jnp.dot(x_ref[...], w1_ref[...], preferred_element_type=jnp.float32)
    h = jnp.maximum(h + b1_ref[...], 0.0)                      # (TB, H_pad) f32
    # Second Linear (out_features == 1): VPU multiply + lane reduction instead
    # of an N=1 MXU pass.
    y = jnp.sum(h * w2_ref[...], axis=-1, keepdims=True)       # (TB, 1)
    o_ref[...] = (y + b2_ref[0, 0]).astype(o_ref.dtype)


def _mlp_kernel_ktiled(x_ref, w1_ref, b1_ref, w2_ref, b2_ref, o_ref, acc_ref):
    """K-tiled fallback for very large input_size (f32 VMEM accumulator)."""
    k = pl.program_id(1)

    @pl.when(k == 0)
    def _():
        acc_ref[...] = jnp.zeros_like(acc_ref)

    acc_ref[...] += jnp.dot(x_ref[...], w1_ref[...],
                            preferred_element_type=jnp.float32)

    @pl.when(k == pl.num_programs(1) - 1)
    def _():
        h = jnp.maximum(acc_ref[...] + b1_ref[...], 0.0)
        y = jnp.sum(h * w2_ref[...], axis=-1, keepdims=True)
        o_ref[...] = (y + b2_ref[0, 0]).astype(o_ref.dtype)


# --------------------------------------------------------------------------- #
# Parameter preparation (done once, outside the per-call path)
# --------------------------------------------------------------------------- #
def prepare_params(w1, b1, w2, b2, *, compute_dtype=jnp.bfloat16,
                   block_k=1024, force_ktiled=False):
    """Pad/cast weights once.  Chooses resident-w1 vs k-tiled layout.

    w1: (input_size, hidden), b1: (hidden,), w2: (hidden, 1), b2: (1,)
    """
    D, H = w1.shape
    H_pad = _round_up(H, 128)
    cbytes = jnp.dtype(compute_dtype).itemsize
    budget = _vmem_budget_bytes()

    D128 = _round_up(D, 128)
    resident_w1_bytes = 2 * D128 * H_pad * cbytes   # budget a double buffer
    if resident_w1_bytes <= budget // 2 and not force_ktiled:
        D_pad, tk = D128, None                      # w1 fully resident, no k axis
    else:
        # choose TK (multiple of 128) minimizing padding, so D_pad = nk * TK
        nk = _cdiv(D128, block_k)
        tk = _round_up(_cdiv(D128, nk), 128)
        D_pad = nk * tk

    w1p = jnp.zeros((D_pad, H_pad), compute_dtype).at[:D, :H].set(
        w1.astype(compute_dtype))
    b1p = jnp.zeros((1, H_pad), jnp.float32).at[0, :H].set(b1.astype(jnp.float32))
    w2p = jnp.zeros((1, H_pad), jnp.float32).at[0, :H].set(
        jnp.reshape(w2, (-1,)).astype(jnp.float32))
    b2p = jnp.asarray(b2, jnp.float32).reshape(1, 1)

    return dict(w1=w1p, b1=b1p, w2=w2p, b2=b2p,
                D=D, H=H, tk=tk, vmem_budget=budget)


# --------------------------------------------------------------------------- #
# Forward
# --------------------------------------------------------------------------- #
def lnn_forward(x, params, *, block_b=1024, core_parallel=False):
    """Forward pass of LNNmodelv2: relu(flatten(x) @ W1 + b1) @ W2 + b2.

    x       : (B, ...) with prod(trailing dims) == params['D']
              (flattened row-major, like torch.nn.Flatten).
    params  : output of prepare_params (weights already padded / cast).
    Returns (B, 1) float32.
    """
    w1p, b1p, w2p, b2p = params["w1"], params["b1"], params["w2"], params["b2"]
    D = params["D"]
    TK = params["tk"]
    budget = params["vmem_budget"]
    D_pad, H_pad = w1p.shape
    compute_dtype = w1p.dtype
    cbytes = jnp.dtype(compute_dtype).itemsize

    B = x.shape[0]
    xf = x.reshape(B, -1)                      # nn.Flatten()
    assert xf.shape[1] == D, "input feature size mismatch"
    if xf.dtype != compute_dtype:
        xf = xf.astype(compute_dtype)          # single cast of the streaming operand

    # ---- adaptive batch tiling: pad B only to a multiple of 8, not of TB ----
    small = 4 * 2 * H_pad * 4 + 4096           # b1/w2 double-buffers + slack
    if TK is None:                             # resident-w1, 1-D grid
        fixed = 2 * D_pad * H_pad * cbytes + small
        per_row = 2 * D_pad * cbytes + 2 * 128 * 4
    else:                                      # k-tiled with f32 accumulator
        fixed = 2 * TK * H_pad * cbytes + small
        per_row = 2 * TK * cbytes + H_pad * 4 + 2 * 128 * 4

    avail = max(budget - fixed, 8 * per_row)
    tb_cap = max(8, min(block_b, (avail // per_row) // 8 * 8))
    B8 = _round_up(B, 8)
    nb = _cdiv(B8, tb_cap)
    TB = _round_up(_cdiv(B8, nb), 8)           # <= tb_cap, waste < 8 rows/tile
    B_pad = nb * TB

    if B_pad != B or D_pad != xf.shape[1]:
        xf = jnp.pad(xf, ((0, B_pad - B), (0, D_pad - xf.shape[1])))

    vmem_limit = int(min(budget, max(fixed + TB * per_row + (2 << 20), 32 << 20)))

    # On v7x, CORE_PARALLEL actually shards batch tiles across the two
    # TensorCores; only meaningful with >= 2 batch tiles.
    batch_sem = (pltpu.CORE_PARALLEL if (core_parallel and nb >= 2)
                 else pltpu.PARALLEL)

    if TK is None:
        out = pl.pallas_call(
            _mlp_kernel_resident,
            out_shape=jax.ShapeDtypeStruct((B_pad, 1), jnp.float32),
            grid_spec=pltpu.PrefetchScalarGridSpec(
                num_scalar_prefetch=0,
                grid=(nb,),
                in_specs=[
                    pl.BlockSpec((TB, D_pad), lambda i: (i, 0)),        # x tile
                    pl.BlockSpec((D_pad, H_pad), lambda i: (0, 0)),     # w1 resident
                    pl.BlockSpec((1, H_pad), lambda i: (0, 0)),         # b1 resident
                    pl.BlockSpec((1, H_pad), lambda i: (0, 0)),         # w2 resident
                    pl.BlockSpec(memory_space=pltpu.MemorySpace.SMEM),  # b2 scalar
                ],
                out_specs=pl.BlockSpec((TB, 1), lambda i: (i, 0)),
            ),
            compiler_params=pltpu.CompilerParams(
                dimension_semantics=(batch_sem,),
                vmem_limit_bytes=vmem_limit,
            ),
        )(xf, w1p, b1p, w2p, b2p)
    else:
        nk = D_pad // TK
        out = pl.pallas_call(
            _mlp_kernel_ktiled,
            out_shape=jax.ShapeDtypeStruct((B_pad, 1), jnp.float32),
            grid_spec=pltpu.PrefetchScalarGridSpec(
                num_scalar_prefetch=0,
                grid=(nb, nk),
                in_specs=[
                    pl.BlockSpec((TB, TK), lambda i, k: (i, k)),        # x tile
                    pl.BlockSpec((TK, H_pad), lambda i, k: (k, 0)),     # w1 tile
                    pl.BlockSpec((1, H_pad), lambda i, k: (0, 0)),      # b1 resident
                    pl.BlockSpec((1, H_pad), lambda i, k: (0, 0)),      # w2 resident
                    pl.BlockSpec(memory_space=pltpu.MemorySpace.SMEM),  # b2 scalar
                ],
                out_specs=pl.BlockSpec((TB, 1), lambda i, k: (i, 0)),
                scratch_shapes=[pltpu.VMEM((TB, H_pad), jnp.float32)],  # accumulator
            ),
            compiler_params=pltpu.CompilerParams(
                dimension_semantics=(batch_sem, pltpu.ARBITRARY),
                vmem_limit_bytes=vmem_limit,
            ),
        )(xf, w1p, b1p, w2p, b2p)

    return out[:B]


def init_params(key, input_size, hidden_size):
    """Deterministic init mimicking nn.Linear's U(-1/sqrt(fan_in), 1/sqrt(fan_in))."""
    k1, k2, k3, k4 = jax.random.split(key, 4)
    lim1 = 1.0 / jnp.sqrt(jnp.float32(input_size))
    lim2 = 1.0 / jnp.sqrt(jnp.float32(hidden_size))
    w1 = jax.random.uniform(k1, (input_size, hidden_size), jnp.float32, -lim1, lim1)
    b1 = jax.random.uniform(k2, (hidden_size,), jnp.float32, -lim1, lim1)
    w2 = jax.random.uniform(k3, (hidden_size, 1), jnp.float32, -lim2, lim2)
    b2 = jax.random.uniform(k4, (1,), jnp.float32, -lim2, lim2)
    return w1, b1, w2, b2


if __name__ == "__main__":
    # Small shapes consistent with the module (NCHW input, hidden_size=128 default).
    B, C, Hh, Ww = 2, 4, 16, 16
    input_size = C * Hh * Ww          # 1024
    hidden_size = 128                 # module default (lane-dense)

    key = jax.random.PRNGKey(0)
    kx, kp = jax.random.split(key)
    x = jax.random.normal(kx, (B, C, Hh, Ww), jnp.float32)
    w1, b1, w2, b2 = init_params(kp, input_size, hidden_size)

    # Pure-JAX reference.
    x_flat = x.reshape(B, -1)
    ref = jnp.maximum(x_flat @ w1 + b1, 0.0) @ w2 + b2

    # Default path: bf16 streaming operands, resident w1, no k axis.
    params_bf16 = prepare_params(w1, b1, w2, b2)
    out = lnn_forward(x, params_bf16)
    jax.block_until_ready(out)
    assert out.shape == (B, 1)
    assert jnp.allclose(out, ref, atol=5e-2, rtol=5e-2)

    # f32 streaming path (tight numerical check of the resident kernel).
    params_f32 = prepare_params(w1, b1, w2, b2, compute_dtype=jnp.float32)
    out_f32 = lnn_forward(x, params_f32)
    jax.block_until_ready(out_f32)
    assert jnp.allclose(out_f32, ref, atol=1e-3, rtol=1e-3)

    # K-tiled fallback path (exercised via force_ktiled to validate the
    # accumulator kernel used when input_size is too large for resident w1).
    params_kt = prepare_params(w1, b1, w2, b2, compute_dtype=jnp.float32,
                               block_k=256, force_ktiled=True)
    out_kt = lnn_forward(x, params_kt)
    jax.block_until_ready(out_kt)
    assert jnp.allclose(out_kt, ref, atol=1e-3, rtol=1e-3)

    print("KERNEL_OK")
</pallas_src>

<mosaic_0001>
module attributes {stable_mosaic.version = 11 : i64} {
  func.func @_mlp_kernel_resident(%arg0: i32, %arg1: memref<8x1024xbf16, #tpu.memory_space<vmem>>, %arg2: memref<1024x128xbf16, #tpu.memory_space<vmem>>, %arg3: memref<1x128xf32, #tpu.memory_space<vmem>>, %arg4: memref<1x128xf32, #tpu.memory_space<vmem>>, %arg5: memref<1x1xf32, #tpu.memory_space<smem>>, %arg6: memref<8x1xf32, #tpu.memory_space<vmem>>) attributes {dimension_semantics = [#tpu.dimension_semantics<parallel>], iteration_bounds = array<i64: 1>, scalar_prefetch = 0 : i64, scratch_operands = 0 : i64, tpu.core_type = #tpu.core_type<tc>, window_params = [{transform_indices = @transform_0, window_bounds = array<i64: 8, 1024>}, {pipeline_mode = #tpu.pipeline_mode<synchronous>, transform_indices = @transform_1, window_bounds = array<i64: 1024, 128>}, {pipeline_mode = #tpu.pipeline_mode<synchronous>, transform_indices = @transform_2, window_bounds = array<i64: 1, 128>}, {pipeline_mode = #tpu.pipeline_mode<synchronous>, transform_indices = @transform_3, window_bounds = array<i64: 1, 128>}, {transform_indices = @transform_4, window_bounds = array<i64: 1, 1>}, {transform_indices = @transform_5, window_bounds = array<i64: 8, 1>}]} {
    %c0 = arith.constant 0 : index
    %c0_0 = arith.constant 0 : index
    %0 = vector.load %arg1[%c0, %c0_0] : memref<8x1024xbf16, #tpu.memory_space<vmem>>, vector<8x1024xbf16>
    %c0_1 = arith.constant 0 : index
    %c0_2 = arith.constant 0 : index
    %1 = vector.load %arg2[%c0_1, %c0_2] : memref<1024x128xbf16, #tpu.memory_space<vmem>>, vector<1024x128xbf16>
    %cst = arith.constant dense<0.000000e+00> : vector<8x128xf32>
    %2 = tpu.matmul %0, %1, %cst {dimension_numbers = #tpu.dot_dimension_numbers<[1], [0], [0], [1], [0, 0, 1, 1], [], []>} : vector<8x1024xbf16>, vector<1024x128xbf16>, vector<8x128xf32> -> vector<8x128xf32>
    %c0_3 = arith.constant 0 : index
    %c0_4 = arith.constant 0 : index
    %3 = vector.load %arg3[%c0_3, %c0_4] : memref<1x128xf32, #tpu.memory_space<vmem>>, vector<1x128xf32>
    %4 = vector.broadcast %3 : vector<1x128xf32> to vector<8x128xf32>
    %5 = arith.addf %2, %4 : vector<8x128xf32>
    %cst_5 = arith.constant 0.000000e+00 : f32
    %6 = vector.broadcast %cst_5 : f32 to vector<8x128xf32>
    %7 = arith.maximumf %5, %6 : vector<8x128xf32>
    %c0_6 = arith.constant 0 : index
    %c0_7 = arith.constant 0 : index
    %8 = vector.load %arg4[%c0_6, %c0_7] : memref<1x128xf32, #tpu.memory_space<vmem>>, vector<1x128xf32>
    %9 = vector.broadcast %8 : vector<1x128xf32> to vector<8x128xf32>
    %10 = arith.mulf %7, %9 : vector<8x128xf32>
    %cst_8 = arith.constant dense<0.000000e+00> : vector<8xf32>
    %11 = vector.multi_reduction <add>, %10, %cst_8 [1] : vector<8x128xf32> to vector<8xf32>
    %12 = vector.shape_cast %11 : vector<8xf32> to vector<8x1xf32>
    %c0_9 = arith.constant 0 : index
    %c0_10 = arith.constant 0 : index
    %13 = memref.load %arg5[%c0_9, %c0_10] : memref<1x1xf32, #tpu.memory_space<smem>>
    %14 = vector.broadcast %13 : f32 to vector<8x1xf32>
    %15 = arith.addf %12, %14 : vector<8x1xf32>
    %c0_11 = arith.constant 0 : index
    %c0_12 = arith.constant 0 : index
    %16 = vector.load %arg6[%c0_11, %c0_12] : memref<8x1xf32, #tpu.memory_space<vmem>>, vector<8x1xf32>
    tpu.vector_store %arg6[%c0_11, %c0_12], %15 {strides = array<i32>} : memref<8x1xf32, #tpu.memory_space<vmem>>, vector<8x1xf32>,
    return
  }
  func.func @transform_0(%arg0: i32) -> (i32, i32) {
    %c0_i32 = arith.constant 0 : i32
    %c0_i32_0 = arith.constant 0 : i32
    return %arg0, %c0_i32 : i32, i32
  }
  func.func @transform_1(%arg0: i32) -> (i32, i32) {
    %c0_i32 = arith.constant 0 : i32
    %c0_i32_0 = arith.constant 0 : i32
    %c0_i32_1 = arith.constant 0 : i32
    return %c0_i32, %c0_i32_0 : i32, i32
  }
  func.func @transform_2(%arg0: i32) -> (i32, i32) {
    %c0_i32 = arith.constant 0 : i32
    %c0_i32_0 = arith.constant 0 : i32
    %c0_i32_1 = arith.constant 0 : i32
    return %c0_i32, %c0_i32_0 : i32, i32
  }
  func.func @transform_3(%arg0: i32) -> (i32, i32) {
    %c0_i32 = arith.constant 0 : i32
    %c0_i32_0 = arith.constant 0 : i32
    %c0_i32_1 = arith.constant 0 : i32
    return %c0_i32, %c0_i32_0 : i32, i32
  }
  func.func @transform_4(%arg0: i32) -> (i32, i32) {
    %c0_i32 = arith.constant 0 : i32
    %c0_i32_0 = arith.constant 0 : i32
    %c0_i32_1 = arith.constant 0 : i32
    return %c0_i32, %c0_i32_0 : i32, i32
  }
  func.func @transform_5(%arg0: i32) -> (i32, i32) {
    %c0_i32 = arith.constant 0 : i32
    %c0_i32_0 = arith.constant 0 : i32
    return %arg0, %c0_i32 : i32, i32
  }
}

</mosaic_0001>

<bundles_post_ra>
// kernel: tpu_custom_call.1
= control target key start
LH: loop header
LB: loop body
LE: loop exit
PB: predicated region body
PF: predicated region fallthrough
CT: control target
= control target key end

     0   :  { %11 = vsyncpa [#allocation4], 0  ;;  %s1152_s0 = inlined_call_operand.hbm [shape: bf16[8,1024], index: 0, kind: input, shape index: {}]   ;;  %s1153_s1 = inlined_call_operand.hbm [shape: bf16[1024,128], index: 1, kind: input, shape index: {}]   ;;  %s1154_s2 = inlined_call_operand.vmem [shape: f32[1,128], index: 2, kind: input, shape index: {}]   ;;  %s1155_s3 = inlined_call_operand.vmem [shape: f32[1,128], index: 3, kind: input, shape index: {}]   ;;  %s1156_s4 = inlined_call_operand.<no memory space> [shape: f32[1,1], index: 4, kind: input, shape index: {}]   ;;  %s1157_s5 = inlined_call_operand.vmem [shape: f32[8,1], index: 5, kind: output, shape index: {}]  }
   0x1   :  { %s18_s20 = sshll.u32 %s1152_s0, 4  ;;  %s19_s20 = int_to_ptr.hbm [resolvable:$true] %s18_s20 }
   0x2   :  { %12 = vsyncpa [#allocation6], 0  ;;  %s1100_s21 = smov [#allocation3]   ;;  %s28_s25 = sshll.u32 %s1153_s1, 4  ;;  %s29_s25 = int_to_ptr.hbm [resolvable:$true] %s28_s25 }
   0x3   :  { %s20_s22 = sshll.u32 %s1100_s21, 4  ;;  %s1101_s26 = smov [#allocation5]   ;;  %s21_s22 = int_to_ptr.vmem [resolvable:$true] %s20_s22 }
   0x4   :  { %23 = dma.hbm_to_vmem [thread:$0]  %s19_s20, 512, %s21_s22, [#allocation4]  }
   0x5   :  { %s30_s27 = sshll.u32 %s1101_s26, 4  ;;  %s1102_s28 = smov 64   ;;  %s31_s27 = int_to_ptr.vmem [resolvable:$true] %s30_s27 }
   0x6   :  { %s1103_s29 = smov 4  }
   0x7   :  { %36 = dma.hbm_to_vmem [thread:$0]  %s29_s25, 8192, %s31_s27, [#allocation6], %s1102_s28, %s1102_s28, %s1103_s29  }
   0x8   :  { %1096 = dma.done.wait [#allocation4], 512  }
   0x9   :  { %1097 = vsyncadd [#allocation4], 4294966784 }
   0xa   :  { %1098 = dma.done.wait [#allocation6], 8192  }
   0xb   :  { %1099 = vsyncadd [#allocation6], 4294959104  ;;  %v985_v0 = vld [vmem:[#allocation5 + $0x38] sm:$0xff]  ;;  %v984_v4 = vld [vmem:[#allocation5 + $0x30] sm:$0xff]  ;;  %vm714_vm0 = vcmask 7168  }
   0xc   :  { %v993_v1 = vld [vmem:[#allocation5 + $0x78] sm:$0xff]  ;;  %599 = vmatpush.bf16.msra.mxu0 %v985_v0  ;;  %v992_v5 = vld [vmem:[#allocation5 + $0x70] sm:$0xff]  ;;  %v983_v8 = vld [vmem:[#allocation5 + $0x28] sm:$0xff] }
   0xd   :  { %v1001_v2 = vld [vmem:[#allocation5 + $0xb8] sm:$0xff]  ;;  %612 = vmatpush.bf16.msra.mxu1 %v993_v1  ;;  %v1000_v6 = vld [vmem:[#allocation5 + $0xb0] sm:$0xff]  ;;  %v991_v9 = vld [vmem:[#allocation5 + $0x68] sm:$0xff] }
   0xe   :  { %v1009_v3 = vld [vmem:[#allocation5 + $0xf8] sm:$0xff]  ;;  %625 = vmatpush.bf16.msra.mxu2 %v1001_v2  ;;  %v1008_v7 = vld [vmem:[#allocation5 + $0xf0] sm:$0xff]  ;;  %v999_v10 = vld [vmem:[#allocation5 + $0xa8] sm:$0xff] }
   0xf   :  { %638 = vmatpush.bf16.msra.mxu3 %v1009_v3  ;;  %v1007_v11 = vld [vmem:[#allocation5 + $0xe8] sm:$0xff]  ;;  %v982_v12 = vld [vmem:[#allocation5 + $0x20] sm:$0xff]  ;;  %v981_v16 = vld [vmem:[#allocation5 + $0x18] sm:$0xff] }
  0x10   :  { %600 = vmatpush.bf16.msra.mxu0 %v984_v4  ;;  %v990_v13 = vld [vmem:[#allocation5 + $0x60] sm:$0xff]  ;;  %v989_v17 = vld [vmem:[#allocation5 + $0x58] sm:$0xff]  ;;  %v980_v20 = vld [vmem:[#allocation5 + $0x10] sm:$0xff] }
  0x11   :  { %613 = vmatpush.bf16.msra.mxu1 %v992_v5  ;;  %v998_v14 = vld [vmem:[#allocation5 + $0xa0] sm:$0xff]  ;;  %v997_v18 = vld [vmem:[#allocation5 + $0x98] sm:$0xff]  ;;  %v988_v21 = vld [vmem:[#allocation5 + $0x50] sm:$0xff] }
  0x12   :  { %626 = vmatpush.bf16.msra.mxu2 %v1000_v6  ;;  %v1006_v15 = vld [vmem:[#allocation5 + $0xe0] sm:$0xff]  ;;  %v1005_v19 = vld [vmem:[#allocation5 + $0xd8] sm:$0xff]  ;;  %v996_v22 = vld [vmem:[#allocation5 + $0x90] sm:$0xff] }
  0x13   :  { %639 = vmatpush.bf16.msra.mxu3 %v1008_v7  ;;  %v1004_v23 = vld [vmem:[#allocation5 + $0xd0] sm:$0xff]  ;;  %v979_v24 = vld [vmem:[#allocation5 + $0x8] sm:$0xff]  ;;  %v51_v29 = vld [vmem:[#allocation3] sm:$0xff] }
  0x14   :  { %601 = vmatpush.bf16.msra.mxu0 %v983_v8  ;;  %v987_v25 = vld [vmem:[#allocation5 + $0x48] sm:$0xff]  ;;  %v978_v30 = vld [vmem:[#allocation5] sm:$0xff]  ;;  %v191_v33 = vunpack.c.l.b16 %v51_v29  ;;  %v192_v37 = vunpack.c.h.b16 %v51_v29  ;;  %v1017_v38 = vld [vmem:[#allocation5 + $0x138] sm:$0xff] }
  0x15   :  { %614 = vmatpush.bf16.msra.mxu1 %v991_v9  ;;  %v995_v26 = vld [vmem:[#allocation5 + $0x88] sm:$0xff]  ;;  %v986_v31 = vld [vmem:[#allocation5 + $0x40] sm:$0xff]  ;;  %v1025_v39 = vld [vmem:[#allocation5 + $0x178] sm:$0xff] }
  0x16   :  { %627 = vmatpush.bf16.msra.mxu2 %v999_v10  ;;  %v1003_v27 = vld [vmem:[#allocation5 + $0xc8] sm:$0xff]  ;;  %v994_v34 = vld [vmem:[#allocation5 + $0x80] sm:$0xff]  ;;  %v1033_v40 = vld [vmem:[#allocation5 + $0x1b8] sm:$0xff]  ;;  %v199_v43 = vpack.c.b16 %v191_v33, %v191_v33  ;;  %v200_v45 = vpack.c.b16 %v192_v37, %v192_v37 }
  0x17   :  { %640 = vmatpush.bf16.msra.mxu3 %v1007_v11  ;;  %v52_v28 = vld [vmem:[#allocation3 + $0x8] sm:$0xff]  ;;  %v1002_v35 = vld [vmem:[#allocation5 + $0xc0] sm:$0xff]  ;;  %v1041_v41 = vld [vmem:[#allocation5 + $0x1f8] sm:$0xff] }
  0x18   :  { %602 = vmatpush.bf16.msra.mxu0 %v982_v12  ;;  %v193_v32 = vunpack.c.l.b16 %v52_v28  ;;  %v194_v36 = vunpack.c.h.b16 %v52_v28  ;;  %v1016_v46 = vld [vmem:[#allocation5 + $0x130] sm:$0xff]  ;;  %v1015_v50 = vld [vmem:[#allocation5 + $0x128] sm:$0xff]  ;;  %v1014_v54 = vld [vmem:[#allocation5 + $0x120] sm:$0xff] }
  0x19   :  { %615 = vmatpush.bf16.msra.mxu1 %v990_v13  ;;  %v1024_v47 = vld [vmem:[#allocation5 + $0x170] sm:$0xff]  ;;  %v1023_v51 = vld [vmem:[#allocation5 + $0x168] sm:$0xff]  ;;  %v1022_v55 = vld [vmem:[#allocation5 + $0x160] sm:$0xff] }
  0x1a   :  { %628 = vmatpush.bf16.msra.mxu2 %v998_v14  ;;  %v201_v42 = vpack.c.b16 %v193_v32, %v193_v32  ;;  %v202_v44 = vpack.c.b16 %v194_v36, %v194_v36  ;;  %v1032_v48 = vld [vmem:[#allocation5 + $0x1b0] sm:$0xff]  ;;  %v1031_v52 = vld [vmem:[#allocation5 + $0x1a8] sm:$0xff]  ;;  %v1030_v56 = vld [vmem:[#allocation5 + $0x1a0] sm:$0xff] }
  0x1b   :  { %641 = vmatpush.bf16.msra.mxu3 %v1006_v15  ;;  %v1040_v49 = vld [vmem:[#allocation5 + $0x1f0] sm:$0xff]  ;;  %v1039_v53 = vld [vmem:[#allocation5 + $0x1e8] sm:$0xff]  ;;  %v1038_v57 = vld [vmem:[#allocation5 + $0x1e0] sm:$0xff] }
  0x1c   :  { %603 = vmatpush.bf16.msra.mxu0 %v981_v16  ;;  %v1013_v58 = vld [vmem:[#allocation5 + $0x118] sm:$0xff]  ;;  %v1012_v62 = vld [vmem:[#allocation5 + $0x110] sm:$0xff]  ;;  %v1011_v2 = vld [vmem:[#allocation5 + $0x108] sm:$0xff] }
  0x1d   :  { %616 = vmatpush.bf16.msra.mxu1 %v989_v17  ;;  %v1021_v59 = vld [vmem:[#allocation5 + $0x158] sm:$0xff]  ;;  %v1020_v63 = vld [vmem:[#allocation5 + $0x150] sm:$0xff]  ;;  %v1019_v3 = vld [vmem:[#allocation5 + $0x148] sm:$0xff] }
  0x1e   :  { %629 = vmatpush.bf16.msra.mxu2 %v997_v18  ;;  %v1029_v60 = vld [vmem:[#allocation5 + $0x198] sm:$0xff]  ;;  %v1028_v0 = vld [vmem:[#allocation5 + $0x190] sm:$0xff]  ;;  %v1027_v5 = vld [vmem:[#allocation5 + $0x188] sm:$0xff] }
  0x1f   :  { %642 = vmatpush.bf16.msra.mxu3 %v1005_v19  ;;  %v1037_v61 = vld [vmem:[#allocation5 + $0x1d8] sm:$0xff]  ;;  %v1036_v1 = vld [vmem:[#allocation5 + $0x1d0] sm:$0xff]  ;;  %v1035_v6 = vld [vmem:[#allocation5 + $0x1c8] sm:$0xff] }
  0x20   :  { %604 = vmatpush.bf16.msra.mxu0 %v980_v20  ;;  %v53_v4 = vld [vmem:[#allocation3 + $0x10] sm:$0xff]  ;;  %v54_v7 = vld [vmem:[#allocation3 + $0x18] sm:$0xff]  ;;  %v1010_v10 = vld [vmem:[#allocation5 + $0x100] sm:$0xff] }
  0x21   :  { %617 = vmatpush.bf16.msra.mxu1 %v988_v21  ;;  %v195_v8 = vunpack.c.l.b16 %v53_v4  ;;  %v196_v9 = vunpack.c.h.b16 %v53_v4  ;;  %v1018_v11 = vld [vmem:[#allocation5 + $0x140] sm:$0xff]  ;;  %v197_v12 = vunpack.c.l.b16 %v54_v7  ;;  %v198_v13 = vunpack.c.h.b16 %v54_v7 }
  0x22   :  { %630 = vmatpush.bf16.msra.mxu2 %v996_v22  ;;  %v1026_v14 = vld [vmem:[#allocation5 + $0x180] sm:$0xff] }
  0x23   :  { %643 = vmatpush.bf16.msra.mxu3 %v1004_v23  ;;  %v1034_v15 = vld [vmem:[#allocation5 + $0x1c0] sm:$0xff]  ;;  %v203_v16 = vpack.c.b16 %v195_v8, %v195_v8  ;;  %v204_v17 = vpack.c.b16 %v196_v9, %v196_v9  ;;  %v205_v18 = vpack.c.b16 %v197_v12, %v197_v12  ;;  %v206_v19 = vpack.c.b16 %v198_v13, %v198_v13 }
  0x24   :  { %605 = vmatpush.bf16.msra.mxu0 %v979_v24 }
  0x25   :  { %618 = vmatpush.bf16.msra.mxu1 %v987_v25 }
  0x26   :  { %631 = vmatpush.bf16.msra.mxu2 %v995_v26  ;;  %v1046_v26 = vld [vmem:[%s1154_s2] ss:$0 sm:$0xff] }
  0x27   :  { %644 = vmatpush.bf16.msra.mxu3 %v1003_v27 }
  0x28   :  { %606 = vmatpush.bf16.msra.mxu0 %v978_v30 }
  0x29   :  { %619 = vmatpush.bf16.msra.mxu1 %v986_v31 }
  0x2a   :  { %632 = vmatpush.bf16.msra.mxu2 %v994_v34 }
  0x2b   :  { %645 = vmatpush.bf16.msra.mxu3 %v1002_v35  ;;  %607 = vmatmul.bf16.vlgmr.msra.gmra.mxu0 %v199_v43  ;;  %v1047_v43 = vld [vmem:[%s1155_s3] ss:$0 sm:$0xff] }
  0x2c   :  { %651 = vmatpush.bf16.msrb.mxu0 %v1017_v38  ;;  %620 = vmatmul.bf16.vlgmr.msra.gmra.mxu1 %v200_v45 }
  0x2d   :  { %664 = vmatpush.bf16.msrb.mxu1 %v1025_v39  ;;  %633 = vmatmul.bf16.vlgmr.msra.gmra.mxu2 %v201_v42 }
  0x2e   :  { %677 = vmatpush.bf16.msrb.mxu2 %v1033_v40  ;;  %646 = vmatmul.bf16.vlgmr.msra.gmra.mxu3 %v202_v44 }
  0x2f   :  { %690 = vmatpush.bf16.msrb.mxu3 %v1041_v41 }
  0x30   :  { %652 = vmatpush.bf16.msrb.mxu0 %v1016_v46 }
  0x31   :  { %665 = vmatpush.bf16.msrb.mxu1 %v1024_v47 }
  0x32   :  { %678 = vmatpush.bf16.msrb.mxu2 %v1032_v48  ;;  %v712_v48 = vstv %s1156_s4 }
  0x33   :  { %691 = vmatpush.bf16.msrb.mxu3 %v1040_v49 }
  0x34   :  { %653 = vmatpush.bf16.msrb.mxu0 %v1015_v50 }
  0x35   :  { %666 = vmatpush.bf16.msrb.mxu1 %v1023_v51 }
  0x36   :  { %679 = vmatpush.bf16.msrb.mxu2 %v1031_v52 }
  0x37   :  { %692 = vmatpush.bf16.msrb.mxu3 %v1039_v53 }
  0x38   :  { %654 = vmatpush.bf16.msrb.mxu0 %v1014_v54 }
  0x39   :  { %667 = vmatpush.bf16.msrb.mxu1 %v1022_v55 }
  0x3a   :  { %680 = vmatpush.bf16.msrb.mxu2 %v1030_v56 }
  0x3b   :  { %693 = vmatpush.bf16.msrb.mxu3 %v1038_v57 }
  0x3c   :  { %655 = vmatpush.bf16.msrb.mxu0 %v1013_v58 }
  0x3d   :  { %668 = vmatpush.bf16.msrb.mxu1 %v1021_v59 }
  0x3e   :  { %681 = vmatpush.bf16.msrb.mxu2 %v1029_v60 }
  0x3f   :  { %694 = vmatpush.bf16.msrb.mxu3 %v1037_v61 }
  0x40   :  { %656 = vmatpush.bf16.msrb.mxu0 %v1012_v62 }
  0x41   :  { %669 = vmatpush.bf16.msrb.mxu1 %v1020_v63 }
  0x42   :  { %682 = vmatpush.bf16.msrb.mxu2 %v1028_v0 }
  0x43   :  { %695 = vmatpush.bf16.msrb.mxu3 %v1036_v1 }
  0x44   :  { %657 = vmatpush.bf16.msrb.mxu0 %v1011_v2 }
  0x45   :  { %670 = vmatpush.bf16.msrb.mxu1 %v1019_v3 }
  0x46   :  { %683 = vmatpush.bf16.msrb.mxu2 %v1027_v5 }
  0x47   :  { %696 = vmatpush.bf16.msrb.mxu3 %v1035_v6 }
  0x48   :  { %658 = vmatpush.bf16.msrb.mxu0 %v1010_v10 }
  0x49   :  { %671 = vmatpush.bf16.msrb.mxu1 %v1018_v11 }
  0x4a   :  { %684 = vmatpush.bf16.msrb.mxu2 %v1026_v14 }
  0x4b   :  { %697 = vmatpush.bf16.msrb.mxu3 %v1034_v15  ;;  %659 = vmatmul.bf16.vlgmr.msrb.gmra.mxu0 %v203_v16 }
  0x4c   :  { %672 = vmatmul.bf16.vlgmr.msrb.gmra.mxu1 %v204_v17 }
  0x4d   :  { %685 = vmatmul.bf16.vlgmr.msrb.gmra.mxu2 %v205_v18 }
  0x4e   :  { %698 = vmatmul.bf16.vlgmr.msrb.gmra.mxu3 %v206_v19 }
  0xa8   :  { %v608_v20 = vpop.f32.mrf.mxu0 }
  0xa9   :  { %v621_v21 = vpop.f32.mrf.mxu1  ;;  %v609_v29 = vadd.f32 %v1046_v26, %v608_v20 }
  0xab   :  { %v622_v30 = vadd.f32 %v621_v21, %v609_v29 }
  0xb0   :  { %v634_v22 = vpop.f32.mrf.mxu2  ;;  %v610_v24 = vpop.f32.mrf.mxu0 }
  0xb1   :  { %v647_v23 = vpop.f32.mrf.mxu3  ;;  %v623_v25 = vpop.f32.mrf.mxu1  ;;  %v635_v31 = vadd.f32 %v634_v22, %v622_v30 }
  0xb3   :  { %v648_v32 = vadd.f32 %v647_v23, %v635_v31 }
  0xb8   :  { %v636_v27 = vpop.f32.mrf.mxu2 }
  0xb9   :  { %v649_v28 = vpop.f32.mrf.mxu3 }
  0xc8   :  { %v660_v33 = vpop.f32.mrf.mxu0 }
  0xc9   :  { %v673_v34 = vpop.f32.mrf.mxu1  ;;  %v661_v35 = vadd.f32 %v660_v33, %v648_v32 }
  0xcb   :  { %v674_v36 = vadd.f32 %v673_v34, %v661_v35 }
  0xd0   :  { %v686_v37 = vpop.f32.mrf.mxu2  ;;  %v662_v40 = vpop.f32.mrf.mxu0 }
  0xd1   :  { %v699_v38 = vpop.f32.mrf.mxu3  ;;  %v687_v39 = vadd.f32 %v686_v37, %v674_v36  ;;  %v675_v41 = vpop.f32.mrf.mxu1 }
  0xd3   :  { %v700_v42 = vadd.f32 %v699_v38, %v687_v39 }
  0xd5   :  { %v703_v44 = vmax.f32 %v700_v42, 0.0 }
  0xd7   :  { %v708_v45 = vmul.f32 %v1047_v43, %v703_v44 }
  0xd8   :  { %v688_v46 = vpop.f32.mrf.mxu2 }
  0xd9   :  { %v701_v47 = vpop.f32.mrf.mxu3  ;;  %709 = vadd.xlane.f32.xlu0 %v708_v45 }
 0x14c   :  { %v710_v49 = vpop.xlane.xlu0 %709 }
 0x14d   :  { %v713_v50 = vadd.f32 %v712_v48, %v710_v49 }
 0x14f   :  { %715 = vst.msk [vmem:[%s1157_s5] sm:$0xff] %vm714_vm0, %v713_v50 }
 0x150   :  { %720 = vsyncpa [#allocation4], 1 }
 0x151   :  { %721 = vsyncpa [#allocation6], 1 }

</bundles_post_ra>
